<compile_context>
chip_gen: v5e
topology: v5e:2x2
jax: 0.10.0
libtpu: 0.0.40
codegen_flags: <defaults>
</compile_context>

<pallas_src>
import jax
import jax.numpy as jnp
from jax.experimental import pallas as pl
from jax.experimental.pallas import tpu as pltpu

HIDDEN = 128


def critic_kernel(xt_ref, w1t_ref, b1_ref, w2_ref, b2_ref, v_ref):
    # xt_ref: (n_states, TB) batch-on-lanes     w1t_ref: (HIDDEN, n_states)
    # b1_ref: (HIDDEN, 1)    w2_ref: (HIDDEN, 1)    b2_ref: (1, 1) in SMEM
    # v_ref : (1, TB) lane-dense output row
    #
    # Layer 1 on the MXU (K = n_states), f32 accumulate; hT is (HIDDEN, TB) with
    # batch still on lanes.
    # TODO(synk): on v6e/v7x, casting x (the only B-scaled stream) to bf16 in the
    # wrapper halves x DMA bytes; kept f32 to match the PyTorch module's numerics.
    ht = jnp.dot(w1t_ref[...], xt_ref[...], preferred_element_type=jnp.float32)
    ht = jnp.maximum(ht + b1_ref[...], 0.0)                       # bias + ReLU (VPU)
    # Layer 2 (out_features == 1): VPU multiply + sublane (hidden-axis) reduction.
    # Result is already a lane-dense (1, TB) row -> full-width unmasked stores.
    v = jnp.sum(ht * w2_ref[...], axis=0, keepdims=True) + b2_ref[0, 0]
    v_ref[...] = v.astype(v_ref.dtype)


def critic_forward_t(xt, w1t, b1_col, w2_col, b2, *, tile_b=4096):
    """Core entry point. xt: (n_states, B) f32 with batch already on lanes.

    Zero-copy when B is a multiple of the batch tile (the common large-B case).
    Returns (1, B) f32.
    """
    n_states, B = xt.shape
    tile_b = 128 * pl.cdiv(tile_b, 128)           # tile must be a multiple of 128
    TB = min(tile_b, 128 * pl.cdiv(B, 128))       # small B collapses to one step
    num_tiles = pl.cdiv(B, TB)
    B_pad = num_tiles * TB
    if B_pad != B:
        # TODO(synk): replace this pad with in-kernel ragged-tail masking to avoid
        # the extra HBM pass over x when B doesn't divide the tile.
        xt = jnp.pad(xt, ((0, 0), (0, B_pad - B)))

    out = pl.pallas_call(
        critic_kernel,
        out_shape=jax.ShapeDtypeStruct((1, B_pad), jnp.float32),
        grid=(num_tiles,),
        in_specs=[
            pl.BlockSpec((n_states, TB), lambda i: (0, i)),       # x tile (pipelined)
            pl.BlockSpec((HIDDEN, n_states), lambda i: (0, 0)),   # W1 (VMEM-resident)
            pl.BlockSpec((HIDDEN, 1), lambda i: (0, 0)),          # b1 (VMEM-resident)
            pl.BlockSpec((HIDDEN, 1), lambda i: (0, 0)),          # W2 col (resident)
            pl.BlockSpec(memory_space=pltpu.MemorySpace.SMEM),    # b2 scalar
        ],
        out_specs=pl.BlockSpec((1, TB), lambda i: (0, i)),
        compiler_params=pltpu.CompilerParams(
            # Batch tiles are independent.
            # TODO(synk): on v7x use pltpu.CORE_PARALLEL here (and ensure
            # num_tiles >= 2) to actually shard the batch grid across both TCs.
            dimension_semantics=("parallel",),
            # ~5 MiB/step even at TB=8192 (double-buffered x + (128,TB) f32 h);
            # 32 MiB leaves headroom on v7x's 64 MiB VMEM and exceeds v5e's
            # 16 MiB default scoped limit.
            vmem_limit_bytes=32 * 1024 * 1024,
        ),
    )(xt, w1t, b1_col, w2_col, b2)

    return out[:, :B]


def critic_forward(x, w1t, b1_col, w2_col, b2, *, tile_b=4096):
    """Module-compatible entry point. x: (B, n_states) f32 -> (B, 1) f32."""
    B, n_states = x.shape
    tile_b = 128 * pl.cdiv(tile_b, 128)
    TB = min(tile_b, 128 * pl.cdiv(B, 128))
    B_pad = pl.cdiv(B, TB) * TB
    # Fuse the batch->lane transpose with the tile-alignment pad into one XLA
    # materialization: a single HBM pass over x, no separate pad copy.
    xt = jnp.pad(x, ((0, B_pad - B), (0, 0))).T                 # (n_states, B_pad)
    out = critic_forward_t(xt, w1t, b1_col, w2_col, b2, tile_b=tile_b)
    return out[:, :B].reshape(B, 1)


def init_params(key, n_states, hidden=HIDDEN):
    # Mimics torch.nn.Linear default init: U(-1/sqrt(fan_in), +1/sqrt(fan_in)).
    # Stored in the kernel-friendly (== PyTorch) layout:
    #   w1t    (hidden, n_states) == layer1.weight
    #   b1_col (hidden, 1)        == layer1.bias[:, None]
    #   w2_col (hidden, 1)        == layer2.weight.T
    #   b2     (1, 1)             == layer2.bias[None, :]
    k1, k2, k3, k4 = jax.random.split(key, 4)
    bound1 = 1.0 / jnp.sqrt(jnp.float32(n_states))
    bound2 = 1.0 / jnp.sqrt(jnp.float32(hidden))
    w1t = jax.random.uniform(k1, (hidden, n_states), jnp.float32, -bound1, bound1)
    b1_col = jax.random.uniform(k2, (hidden, 1), jnp.float32, -bound1, bound1)
    w2_col = jax.random.uniform(k3, (hidden, 1), jnp.float32, -bound2, bound2)
    b2 = jax.random.uniform(k4, (1, 1), jnp.float32, -bound2, bound2)
    return w1t, b1_col, w2_col, b2


if __name__ == "__main__":
    n_states = 8
    batch = 2
    key = jax.random.PRNGKey(0)
    kx, kx2, kp = jax.random.split(key, 3)
    x = jax.random.normal(kx, (batch, n_states), jnp.float32)
    w1t, b1_col, w2_col, b2 = init_params(kp, n_states)

    v = critic_forward(x, w1t, b1_col, w2_col, b2)
    v = jax.block_until_ready(v)

    # Reference check in plain JAX (same math as the PyTorch module, f32).
    h_ref = jnp.maximum(x @ w1t.T + b1_col[:, 0], 0.0)
    v_ref = h_ref @ w2_col + b2[0, 0]
    assert v.shape == (batch, 1)
    assert jnp.allclose(v, v_ref, atol=1e-4, rtol=1e-4), "mismatch vs reference"

    # Exercise the multi-tile pipelined path + ragged tail with a small tile.
    batch2 = 300
    x2 = jax.random.normal(kx2, (batch2, n_states), jnp.float32)
    v2 = jax.block_until_ready(
        critic_forward(x2, w1t, b1_col, w2_col, b2, tile_b=128))
    h2_ref = jnp.maximum(x2 @ w1t.T + b1_col[:, 0], 0.0)
    v2_ref = h2_ref @ w2_col + b2[0, 0]
    assert v2.shape == (batch2, 1)
    assert jnp.allclose(v2, v2_ref, atol=1e-4, rtol=1e-4), "mismatch (tiled path)"

    print("KERNEL_OK")
</pallas_src>

<mosaic_0001>
module attributes {stable_mosaic.version = 11 : i64} {
  func.func @critic_kernel(%arg0: i32, %arg1: memref<8x128xf32, #tpu.memory_space<vmem>>, %arg2: memref<128x8xf32, #tpu.memory_space<vmem>>, %arg3: memref<128x1xf32, #tpu.memory_space<vmem>>, %arg4: memref<128x1xf32, #tpu.memory_space<vmem>>, %arg5: memref<1x1xf32, #tpu.memory_space<smem>>, %arg6: memref<1x128xf32, #tpu.memory_space<vmem>>) attributes {dimension_semantics = [#tpu.dimension_semantics<parallel>], iteration_bounds = array<i64: 1>, scalar_prefetch = 0 : i64, scratch_operands = 0 : i64, tpu.core_type = #tpu.core_type<tc>, window_params = [{transform_indices = @transform_0, window_bounds = array<i64: 8, 128>}, {pipeline_mode = #tpu.pipeline_mode<synchronous>, transform_indices = @transform_1, window_bounds = array<i64: 128, 8>}, {pipeline_mode = #tpu.pipeline_mode<synchronous>, transform_indices = @transform_2, window_bounds = array<i64: 128, 1>}, {pipeline_mode = #tpu.pipeline_mode<synchronous>, transform_indices = @transform_3, window_bounds = array<i64: 128, 1>}, {transform_indices = @transform_4, window_bounds = array<i64: 1, 1>}, {transform_indices = @transform_5, window_bounds = array<i64: 1, 128>}]} {
    %c0 = arith.constant 0 : index
    %c0_0 = arith.constant 0 : index
    %0 = vector.load %arg2[%c0, %c0_0] : memref<128x8xf32, #tpu.memory_space<vmem>>, vector<128x8xf32>
    %c0_1 = arith.constant 0 : index
    %c0_2 = arith.constant 0 : index
    %1 = vector.load %arg1[%c0_1, %c0_2] : memref<8x128xf32, #tpu.memory_space<vmem>>, vector<8x128xf32>
    %cst = arith.constant dense<0.000000e+00> : vector<128x128xf32>
    %2 = tpu.matmul %0, %1, %cst {dimension_numbers = #tpu.dot_dimension_numbers<[1], [0], [0], [1], [0, 0, 1, 1], [], []>} : vector<128x8xf32>, vector<8x128xf32>, vector<128x128xf32> -> vector<128x128xf32>
    %c0_3 = arith.constant 0 : index
    %c0_4 = arith.constant 0 : index
    %3 = vector.load %arg3[%c0_3, %c0_4] : memref<128x1xf32, #tpu.memory_space<vmem>>, vector<128x1xf32>
    %4 = vector.broadcast %3 : vector<128x1xf32> to vector<128x128xf32>
    %5 = arith.addf %2, %4 : vector<128x128xf32>
    %cst_5 = arith.constant 0.000000e+00 : f32
    %6 = vector.broadcast %cst_5 : f32 to vector<128x128xf32>
    %7 = arith.maximumf %5, %6 : vector<128x128xf32>
    %c0_6 = arith.constant 0 : index
    %c0_7 = arith.constant 0 : index
    %8 = vector.load %arg4[%c0_6, %c0_7] : memref<128x1xf32, #tpu.memory_space<vmem>>, vector<128x1xf32>
    %9 = vector.broadcast %8 : vector<128x1xf32> to vector<128x128xf32>
    %10 = arith.mulf %7, %9 : vector<128x128xf32>
    %cst_8 = arith.constant dense<0.000000e+00> : vector<128xf32>
    %11 = vector.multi_reduction <add>, %10, %cst_8 [0] : vector<128x128xf32> to vector<128xf32>
    %12 = vector.shape_cast %11 : vector<128xf32> to vector<1x128xf32>
    %c0_9 = arith.constant 0 : index
    %c0_10 = arith.constant 0 : index
    %13 = memref.load %arg5[%c0_9, %c0_10] : memref<1x1xf32, #tpu.memory_space<smem>>
    %14 = vector.broadcast %13 : f32 to vector<1x128xf32>
    %15 = arith.addf %12, %14 : vector<1x128xf32>
    %c0_11 = arith.constant 0 : index
    %c0_12 = arith.constant 0 : index
    %16 = vector.load %arg6[%c0_11, %c0_12] : memref<1x128xf32, #tpu.memory_space<vmem>>, vector<1x128xf32>
    tpu.vector_store %arg6[%c0_11, %c0_12], %15 {strides = array<i32>} : memref<1x128xf32, #tpu.memory_space<vmem>>, vector<1x128xf32>,
    return
  }
  func.func @transform_0(%arg0: i32) -> (i32, i32) {
    %c0_i32 = arith.constant 0 : i32
    %c0_i32_0 = arith.constant 0 : i32
    return %c0_i32, %arg0 : i32, i32
  }
  func.func @transform_1(%arg0: i32) -> (i32, i32) {
    %c0_i32 = arith.constant 0 : i32
    %c0_i32_0 = arith.constant 0 : i32
    %c0_i32_1 = arith.constant 0 : i32
    return %c0_i32, %c0_i32_0 : i32, i32
  }
  func.func @transform_2(%arg0: i32) -> (i32, i32) {
    %c0_i32 = arith.constant 0 : i32
    %c0_i32_0 = arith.constant 0 : i32
    %c0_i32_1 = arith.constant 0 : i32
    return %c0_i32, %c0_i32_0 : i32, i32
  }
  func.func @transform_3(%arg0: i32) -> (i32, i32) {
    %c0_i32 = arith.constant 0 : i32
    %c0_i32_0 = arith.constant 0 : i32
    %c0_i32_1 = arith.constant 0 : i32
    return %c0_i32, %c0_i32_0 : i32, i32
  }
  func.func @transform_4(%arg0: i32) -> (i32, i32) {
    %c0_i32 = arith.constant 0 : i32
    %c0_i32_0 = arith.constant 0 : i32
    %c0_i32_1 = arith.constant 0 : i32
    return %c0_i32, %c0_i32_0 : i32, i32
  }
  func.func @transform_5(%arg0: i32) -> (i32, i32) {
    %c0_i32 = arith.constant 0 : i32
    %c0_i32_0 = arith.constant 0 : i32
    return %c0_i32, %arg0 : i32, i32
  }
}

</mosaic_0001>

<bundles_post_ra>
// kernel: tpu_custom_call.1
= control target key start
LH: loop header
LB: loop body
LE: loop exit
PB: predicated region body
PF: predicated region fallthrough
CT: control target
= control target key end

     0   :  { %v468_v1 = vmov 0   ;;  %vm135_vm0 = vcmask 64512   ;;  %s684_s0 = inlined_call_operand.vmem [shape: f32[8,128], index: 0, kind: input, shape index: {}]   ;;  %s685_s1 = inlined_call_operand.vmem [shape: f32[128,8], index: 1, kind: input, shape index: {}]   ;;  %s686_s2 = inlined_call_operand.vmem [shape: f32[128,1], index: 2, kind: input, shape index: {}]   ;;  %s687_s3 = inlined_call_operand.vmem [shape: f32[128,1], index: 3, kind: input, shape index: {}]   ;;  %s688_s4 = inlined_call_operand.<no memory space> [shape: f32[1,1], index: 4, kind: input, shape index: {}]   ;;  %s689_s5 = inlined_call_operand.hbm [shape: f32[1,128], index: 5, kind: output, shape index: {}]  }
   0x1   :  { %v38_v0 = vld [vmem:[%s684_s0] sm:$0xff]  ;;  %441 = vset.pattern.permute.xlu2 %v468_v1  ;;  %440 = vset.pattern.permute.xlu1 %v468_v1  ;;  %v41_v3 = vld [vmem:[%s686_s2 + $0x10] sm:$0xff]  ;;  %v44_v9 = vld [vmem:[%s686_s2 + $0x28] sm:$0xff] }
   0x2   :  { %v43_v2 = vld [vmem:[%s686_s2 + $0x20] sm:$0xff]  ;;  %439 = vset.pattern.permute.xlu0 %v468_v1  ;;  %199 = vmatpush.msra.mxu0 %v38_v0  ;;  %v42_v10 = vld [vmem:[%s686_s2 + $0x18] sm:$0xff]  ;;  %v40_v11 = vld [vmem:[%s686_s2 + $0x8] sm:$0xff] }
   0x3   :  { %v39_v4 = vld [vmem:[%s686_s2] sm:$0xff]  ;;  %434 = vmatpush.msra.mxu1 %v38_v0  ;;  %435 = vmatpush.msra.mxu2 %v38_v0  ;;  %v23_v12 = vld [vmem:[%s685_s1 + $0x8] sm:$0xff] }
   0x4   :  { %v22_v5 = vld [vmem:[%s685_s1] sm:$0xff]  ;;  %436 = vmatpush.msra.mxu3 %v38_v0  ;;  %77 = vperm.xlu2 %441, %v43_v2   ;;  %v27_v13 = vld [vmem:[%s685_s1 + $0x28] sm:$0xff] }
   0x5   :  { %v26_v6 = vld [vmem:[%s685_s1 + $0x20] sm:$0xff]  ;;  %67 = vperm.xlu1 %440, %v41_v3   ;;  %57 = vperm.xlu0 %439, %v39_v4  }
   0x6   :  { %v30_v7 = vld [vmem:[%s685_s1 + $0x40] sm:$0xff]  ;;  %418 = vmatmul.msk.f32.vlgmr.msra.gmra.mxu0 %vm135_vm0, %v22_v5  ;;  %422 = vmatmul.msk.f32.vlgmr.msra.gmra.mxu1 %vm135_vm0, %v26_v6 }
   0x7   :  { %v34_v8 = vld [vmem:[%s685_s1 + $0x60] sm:$0xff]  ;;  %426 = vmatmul.msk.f32.vlgmr.msra.gmra.mxu2 %vm135_vm0, %v30_v7 }
   0x8   :  { %430 = vmatmul.msk.f32.vlgmr.msra.gmra.mxu3 %vm135_vm0, %v34_v8 }
   0x9   :  { %11 = vsyncpa [#allocation4], 0  ;;  %v31_v14 = vld [vmem:[%s685_s1 + $0x48] sm:$0xff]  ;;  %v47_v16 = vld [vmem:[%s686_s2 + $0x40] sm:$0xff]  ;;  %s469_s10 = smov [#allocation3]   ;;  %s409_s14 = sshll.u32 %s689_s5, 4  ;;  %s410_s14 = int_to_ptr.hbm [resolvable:$true] %s409_s14 }
   0xa   :  { %v35_v15 = vld [vmem:[%s685_s1 + $0x68] sm:$0xff]  ;;  %v46_v17 = vld [vmem:[%s686_s2 + $0x38] sm:$0xff]  ;;  %v45_v18 = vld [vmem:[%s686_s2 + $0x30] sm:$0xff]  ;;  %s407_s11 = sshll.u32 %s469_s10, 4  ;;  %s408_s11 = int_to_ptr.vmem [resolvable:$true] %s407_s11 }
   0xb   :  { %v24_v19 = vld [vmem:[%s685_s1 + $0x10] sm:$0xff]  ;;  %v50_v23 = vld [vmem:[%s686_s2 + $0x58] sm:$0xff]  ;;  %v48_v25 = vld [vmem:[%s686_s2 + $0x48] sm:$0xff] }
   0xc   :  { %82 = vperm.xlu2 %441, %v44_v9   ;;  %v28_v20 = vld [vmem:[%s685_s1 + $0x30] sm:$0xff]  ;;  %v25_v26 = vld [vmem:[%s685_s1 + $0x18] sm:$0xff]  ;;  %v52_v31 = vld [vmem:[%s686_s2 + $0x68] sm:$0xff] }
   0xd   :  { %72 = vperm.xlu1 %440, %v42_v10   ;;  %62 = vperm.xlu0 %439, %v40_v11   ;;  %v32_v21 = vld [vmem:[%s685_s1 + $0x50] sm:$0xff]  ;;  %v29_v27 = vld [vmem:[%s685_s1 + $0x38] sm:$0xff]  ;;  %v51_v32 = vld [vmem:[%s686_s2 + $0x60] sm:$0xff] }
   0xe   :  { %419 = vmatmul.msk.f32.gmra.mxu0 %vm135_vm0, %v23_v12  ;;  %423 = vmatmul.msk.f32.gmra.mxu1 %vm135_vm0, %v27_v13  ;;  %v36_v22 = vld [vmem:[%s685_s1 + $0x70] sm:$0xff]  ;;  %v33_v28 = vld [vmem:[%s685_s1 + $0x58] sm:$0xff]  ;;  %v266_v33 = vld [vmem:[%s687_s3 + $0x8] sm:$0xff] }
   0xf   :  { %427 = vmatmul.msk.f32.gmra.mxu2 %vm135_vm0, %v31_v14  ;;  %v49_v24 = vld [vmem:[%s686_s2 + $0x50] sm:$0xff]  ;;  %v37_v29 = vld [vmem:[%s685_s1 + $0x78] sm:$0xff]  ;;  %v265_v34 = vld [vmem:[%s687_s3] sm:$0xff] }
  0x10   :  { %431 = vmatmul.msk.f32.gmra.mxu3 %vm135_vm0, %v35_v15  ;;  %v53_v30 = vld [vmem:[%s686_s2 + $0x70] sm:$0xff]  ;;  %v54_v35 = vld [vmem:[%s686_s2 + $0x78] sm:$0xff]  ;;  %v269_v36 = vld [vmem:[%s687_s3 + $0x20] sm:$0xff] }
  0x11   :  { %v268_v37 = vld [vmem:[%s687_s3 + $0x18] sm:$0xff]  ;;  %v267_v38 = vld [vmem:[%s687_s3 + $0x10] sm:$0xff]  ;;  %v270_v41 = vld [vmem:[%s687_s3 + $0x28] sm:$0xff] }
  0x12   :  { %v272_v39 = vld [vmem:[%s687_s3 + $0x38] sm:$0xff]  ;;  %v271_v40 = vld [vmem:[%s687_s3 + $0x30] sm:$0xff]  ;;  %v274_v43 = vld [vmem:[%s687_s3 + $0x48] sm:$0xff] }
  0x13   :  { %v275_v42 = vld [vmem:[%s687_s3 + $0x50] sm:$0xff]  ;;  %v273_v44 = vld [vmem:[%s687_s3 + $0x40] sm:$0xff]  ;;  %v278_v45 = vld [vmem:[%s687_s3 + $0x68] sm:$0xff] }
  0x14   :  { %97 = vperm.xlu2 %441, %v47_v16   ;;  %v277_v46 = vld [vmem:[%s687_s3 + $0x60] sm:$0xff]  ;;  %v276_v47 = vld [vmem:[%s687_s3 + $0x58] sm:$0xff]  ;;  %v279_v49 = vld [vmem:[%s687_s3 + $0x70] sm:$0xff] }
  0x15   :  { %92 = vperm.xlu1 %440, %v46_v17   ;;  %87 = vperm.xlu0 %439, %v45_v18   ;;  %v280_v48 = vld [vmem:[%s687_s3 + $0x78] sm:$0xff] }
  0x16   :  { %420 = vmatmul.msk.f32.gmra.mxu0 %vm135_vm0, %v24_v19  ;;  %424 = vmatmul.msk.f32.gmra.mxu1 %vm135_vm0, %v28_v20 }
  0x17   :  { %428 = vmatmul.msk.f32.gmra.mxu2 %vm135_vm0, %v32_v21 }
  0x18   :  { %432 = vmatmul.msk.f32.gmra.mxu3 %vm135_vm0, %v36_v22 }
  0x1c   :  { %112 = vperm.xlu2 %441, %v50_v23  }
  0x1d   :  { %107 = vperm.xlu1 %440, %v49_v24   ;;  %102 = vperm.xlu0 %439, %v48_v25  }
  0x1e   :  { %421 = vmatmul.msk.f32.gmra.mxu0 %vm135_vm0, %v25_v26  ;;  %425 = vmatmul.msk.f32.gmra.mxu1 %vm135_vm0, %v29_v27 }
  0x1f   :  { %429 = vmatmul.msk.f32.gmra.mxu2 %vm135_vm0, %v33_v28 }
  0x20   :  { %433 = vmatmul.msk.f32.gmra.mxu3 %vm135_vm0, %v37_v29 }
  0x24   :  { %127 = vperm.xlu2 %441, %v53_v30  }
  0x25   :  { %122 = vperm.xlu1 %440, %v52_v31   ;;  %117 = vperm.xlu0 %439, %v51_v32  }
  0x2c   :  { %288 = vperm.xlu2 %441, %v266_v33  }
  0x2d   :  { %283 = vperm.xlu1 %440, %v265_v34   ;;  %132 = vperm.xlu0 %439, %v54_v35  }
  0x34   :  { %303 = vperm.xlu2 %441, %v269_v36  }
  0x35   :  { %298 = vperm.xlu1 %440, %v268_v37   ;;  %293 = vperm.xlu0 %439, %v267_v38  }
  0x3c   :  { %318 = vperm.xlu2 %441, %v272_v39  }
  0x3d   :  { %313 = vperm.xlu1 %440, %v271_v40   ;;  %308 = vperm.xlu0 %439, %v270_v41  }
  0x44   :  { %333 = vperm.xlu2 %441, %v275_v42  }
  0x45   :  { %328 = vperm.xlu1 %440, %v274_v43   ;;  %323 = vperm.xlu0 %439, %v273_v44  }
  0x4c   :  { %348 = vperm.xlu2 %441, %v278_v45  }
  0x4d   :  { %343 = vperm.xlu1 %440, %v277_v46   ;;  %338 = vperm.xlu0 %439, %v276_v47  }
  0x55   :  { %358 = vperm.xlu1 %440, %v280_v48   ;;  %353 = vperm.xlu0 %439, %v279_v49  }
  0x5e   :  { %v78_v50 = vpop.permute.xlu2 %77 }
  0x66   :  { %v83_v51 = vpop.permute.xlu2 %82 }
  0x6e   :  { %v98_v54 = vpop.permute.xlu2 %97 }
  0x76   :  { %v663_v58 = vpop.permute.xlu2 %112 }
  0x77   :  { %v68_v52 = vpop.permute.xlu1 %67  ;;  %v58_v53 = vpop.permute.xlu0 %57 }
  0x7e   :  { %v665_v1 = vpop.permute.xlu2 %127 }
  0x7f   :  { %v73_v55 = vpop.permute.xlu1 %72  ;;  %v63_v56 = vpop.permute.xlu0 %62 }
  0x83   :  { %v201_v57 = vpop.f32.mrf.mxu0  ;;  %v213_v61 = vpop.f32.mrf.mxu1 }
  0x84   :  { %v202_v8 = vadd.f32 %v201_v57, %v58_v53  ;;  %v214_v26 = vadd.f32 %v213_v61, %v78_v50 }
  0x86   :  { %v289_v7 = vpop.permute.xlu2 %288  ;;  %v249_v14 = vmax.f32 %v202_v8, 0.0  ;;  %v253_v34 = vmax.f32 %v214_v26, 0.0 }
  0x87   :  { %v93_v59 = vpop.permute.xlu1 %92  ;;  %v88_v60 = vpop.permute.xlu0 %87 }
  0x8a   :  { %v225_v6 = vpop.f32.mrf.mxu2 }
  0x8b   :  { %v204_v62 = vpop.f32.mrf.mxu0  ;;  %v216_v2 = vpop.f32.mrf.mxu1  ;;  %v226_v48 = vadd.f32 %v225_v6, %v98_v54 }
  0x8c   :  { %v205_v9 = vadd.f32 %v204_v62, %v63_v56  ;;  %v237_v15 = vpop.f32.mrf.mxu3  ;;  %v217_v30 = vadd.f32 %v216_v2, %v83_v51 }
  0x8e   :  { %v250_v16 = vmax.f32 %v205_v9, 0.0  ;;  %v304_v19 = vpop.permute.xlu2 %303  ;;  %v254_v39 = vmax.f32 %v217_v30, 0.0 }
  0x8f   :  { %v108_v63 = vpop.permute.xlu1 %107  ;;  %v103_v0 = vpop.permute.xlu0 %102  ;;  %v365_v40 = vmul.f32 %v304_v19, %v253_v34 }
  0x90   :  { %v362_v22 = vmul.f32 %v289_v7, %v250_v16 }
  0x92   :  { %v228_v17 = vpop.f32.mrf.mxu2 }
  0x93   :  { %v207_v3 = vpop.f32.mrf.mxu0  ;;  %v219_v12 = vpop.f32.mrf.mxu1 }
  0x94   :  { %v208_v18 = vadd.f32 %v207_v3, %v68_v52  ;;  %v240_v35 = vpop.f32.mrf.mxu3  ;;  %v220_v36 = vadd.f32 %v219_v12, %v88_v60  ;;  %v229_v52 = vadd.f32 %v228_v17, %v103_v0 }
  0x96   :  { %v251_v23 = vmax.f32 %v208_v18, 0.0  ;;  %v319_v41 = vpop.permute.xlu2 %318  ;;  %v255_v45 = vmax.f32 %v220_v36, 0.0  ;;  %v258_v2 = vmax.f32 %v229_v52, 0.0 }
  0x97   :  { %v667_v4 = vpop.permute.xlu1 %122  ;;  %v669_v5 = vpop.permute.xlu0 %117 }
  0x98   :  { %v238_v6 = vadd.f32 %v237_v15, %v669_v5  ;;  %v241_v18 = vadd.f32 %v240_v35, %v667_v4 }
  0x9a   :  { %v231_v37 = vpop.f32.mrf.mxu2  ;;  %v261_v19 = vmax.f32 %v238_v6, 0.0 }
  0x9b   :  { %v210_v13 = vpop.f32.mrf.mxu0  ;;  %v222_v33 = vpop.f32.mrf.mxu1  ;;  %v232_v3 = vadd.f32 %v231_v37, %v108_v63 }
  0x9c   :  { %v211_v20 = vadd.f32 %v210_v13, %v73_v55  ;;  %v223_v42 = vadd.f32 %v222_v33, %v93_v59  ;;  %v257_v55 = vmax.f32 %v226_v48, 0.0  ;;  %v243_v56 = vpop.f32.mrf.mxu3 }
  0x9d   :  { %v259_v12 = vmax.f32 %v232_v3, 0.0 }
  0x9e   :  { %v252_v27 = vmax.f32 %v211_v20, 0.0  ;;  %v256_v49 = vmax.f32 %v223_v42, 0.0  ;;  %v334_v8 = vpop.permute.xlu2 %333 }
  0x9f   :  { %v284_v10 = vpop.permute.xlu1 %283  ;;  %v671_v11 = vpop.permute.xlu0 %132  ;;  %v371_v13 = vmul.f32 %v334_v8, %v259_v12 }
  0xa0   :  { %v361_v21 = vmul.f32 %v284_v10, %v249_v14  ;;  %v368_v57 = vmul.f32 %v319_v41, %v256_v49 }
  0xa2   :  { %v377_v28 = vadd.f32 %v362_v22, %v361_v21  ;;  %v234_v60 = vpop.f32.mrf.mxu2  ;;  %v244_v22 = vadd.f32 %v243_v56, %v665_v1 }
  0xa3   :  { %v235_v9 = vadd.f32 %v234_v60, %v663_v58 }
  0xa4   :  { %v246_v21 = vpop.f32.mrf.mxu3  ;;  %v263_v26 = vmax.f32 %v244_v22, 0.0 }
  0xa5   :  { %v260_v14 = vmax.f32 %v235_v9, 0.0  ;;  %v247_v5 = vadd.f32 %v246_v21, %v671_v11  ;;  %v399_v11 = vstv %s688_s4 }
  0xa7   :  { %v299_v24 = vpop.permute.xlu1 %298  ;;  %v294_v25 = vpop.permute.xlu0 %293  ;;  %v264_v30 = vmax.f32 %v247_v5, 0.0 }
  0xa8   :  { %v363_v29 = vmul.f32 %v294_v25, %v251_v23  ;;  %v364_v31 = vmul.f32 %v299_v24, %v252_v27  ;;  %v349_v24 = vpop.permute.xlu2 %348  ;;  %v262_v25 = vmax.f32 %v241_v18, 0.0 }
  0xaa   :  { %v378_v32 = vadd.f32 %v377_v28, %v363_v29  ;;  %v374_v27 = vmul.f32 %v349_v24, %v262_v25 }
  0xac   :  { %v379_v38 = vadd.f32 %v378_v32, %v364_v31 }
  0xae   :  { %v380_v47 = vadd.f32 %v379_v38, %v365_v40 }
  0xaf   :  { %v314_v43 = vpop.permute.xlu1 %313  ;;  %v309_v44 = vpop.permute.xlu0 %308 }
  0xb0   :  { %v366_v46 = vmul.f32 %v309_v44, %v254_v39  ;;  %v367_v50 = vmul.f32 %v314_v43, %v255_v45 }
  0xb2   :  { %v381_v51 = vadd.f32 %v380_v47, %v366_v46 }
  0xb4   :  { %v382_v53 = vadd.f32 %v381_v51, %v367_v50 }
  0xb6   :  { %v383_v7 = vadd.f32 %v382_v53, %v368_v57 }
  0xb7   :  { %v329_v61 = vpop.permute.xlu1 %328  ;;  %v324_v62 = vpop.permute.xlu0 %323 }
  0xb8   :  { %v369_v59 = vmul.f32 %v324_v62, %v257_v55  ;;  %v370_v10 = vmul.f32 %v329_v61, %v258_v2 }
  0xba   :  { %v384_v54 = vadd.f32 %v383_v7, %v369_v59 }
  0xbc   :  { %v385_v0 = vadd.f32 %v384_v54, %v370_v10 }
  0xbe   :  { %v386_v63 = vadd.f32 %v385_v0, %v371_v13 }
  0xbf   :  { %v344_v16 = vpop.permute.xlu1 %343  ;;  %v339_v17 = vpop.permute.xlu0 %338 }
  0xc0   :  { %v372_v20 = vmul.f32 %v339_v17, %v260_v14  ;;  %v373_v23 = vmul.f32 %v344_v16, %v261_v19 }
  0xc2   :  { %v387_v58 = vadd.f32 %v386_v63, %v372_v20 }
  0xc4   :  { %v388_v15 = vadd.f32 %v387_v58, %v373_v23 }
  0xc6   :  { %v389_v4 = vadd.f32 %v388_v15, %v374_v27 }
  0xc7   :  { %v359_v28 = vpop.permute.xlu1 %358  ;;  %v354_v29 = vpop.permute.xlu0 %353 }
  0xc8   :  { %v375_v31 = vmul.f32 %v354_v29, %v263_v26  ;;  %v376_v32 = vmul.f32 %v359_v28, %v264_v30 }
  0xca   :  { %v390_v33 = vadd.f32 %v389_v4, %v375_v31 }
  0xcc   :  { %v391_v34 = vadd.f32 %v390_v33, %v376_v32 }
  0xce   :  { %v392_v35 = vrot.slane %v391_v34, 4 }
  0xd0   :  { %v393_v36 = vadd.f32 %v392_v35, %v391_v34 }
  0xd2   :  { %v394_v1 = vrot.slane %v393_v36, 2 }
  0xd4   :  { %v395_v37 = vadd.f32 %v394_v1, %v393_v36 }
  0xd6   :  { %v396_v38 = vrot.slane %v395_v37, 1 }
  0xd8   :  { %v397_v39 = vadd.f32 %v396_v38, %v395_v37 }
  0xda   :  { %v400_v40 = vadd.f32 %v399_v11, %v397_v39 }
  0xdc   :  { %401 = vst [vmem:[#allocation3] sm:$0x1] %v400_v40 }
  0xdd   :  { %412 = dma.vmem_to_hbm [thread:$0]  %s408_s11, 16, %s410_s14, [#allocation4]  }
  0xde   :  { %466 = dma.done.wait [#allocation4], 16  }
  0xdf   :  { %467 = vsyncadd [#allocation4], 4294967280 }
  0xe0   :  { %417 = vsyncpa [#allocation4], 1 }

</bundles_post_ra>
